<compile_context>
chip_gen: v7x
topology: tpu7x:2x2x1
jax: 0.10.0
libtpu: 0.0.40
codegen_flags: <defaults>
</compile_context>

<pallas_src>
import jax
import jax.numpy as jnp
from jax.experimental import pallas as pl
from jax.experimental.pallas import tpu as pltpu


# ----------------------------------------------------------------------------
# Kernel 1: image preprocessing  (x - mean) * inv_std, lane-dense (B, C, HW)
# ----------------------------------------------------------------------------
def _preprocess_kernel(img_ref, mean_ref, inv_std_ref, out_ref):
    # img_ref: (1, C, T) block (any input dtype); mean/inv_std: (1, C, 1) f32.
    x = img_ref[...].astype(jnp.float32)
    out_ref[...] = (x - mean_ref[...]) * inv_std_ref[...]


def preprocess_image(images, pixel_mean, pixel_std, *, hw_tile=None):
    """Normalize images.  Accepts f32 (or uint8) NCHW images."""
    B, C, H, W = images.shape
    HW = H * W

    # Lane-dense tiling over the spatial axis: whole HW if small, otherwise a
    # large 128-multiple tile to keep DMA/compute pipelined for real image sizes.
    if hw_tile is None:
        hw_tile = HW
        if HW > 32768:
            for t in (32768, 16384, 8192, 4096, 2048, 1024):
                if HW % t == 0:
                    hw_tile = t
                    break

    x = images.reshape(B, C, HW)
    mean = jnp.asarray(pixel_mean, jnp.float32).reshape(1, C, 1)
    inv_std = (1.0 / jnp.asarray(pixel_std, jnp.float32)).reshape(1, C, 1)

    out = pl.pallas_call(
        _preprocess_kernel,
        out_shape=jax.ShapeDtypeStruct((B, C, HW), jnp.float32),
        grid_spec=pltpu.PrefetchScalarGridSpec(
            num_scalar_prefetch=0,
            grid=(B, HW // hw_tile),
            in_specs=[
                pl.BlockSpec((1, C, hw_tile), lambda b, t: (b, 0, t)),
                # Tiny invariant constants: whole-operand VMEM residents
                # (single copy, not part of the double-buffered pipeline).
                pl.BlockSpec(memory_space=pltpu.MemorySpace.VMEM),
                pl.BlockSpec(memory_space=pltpu.MemorySpace.VMEM),
            ],
            out_specs=pl.BlockSpec((1, C, hw_tile), lambda b, t: (b, 0, t)),
        ),
        compiler_params=pltpu.CompilerParams(
            dimension_semantics=("parallel", "parallel")),
    )(x, mean, inv_std)
    return out.reshape(B, C, H, W)


# ----------------------------------------------------------------------------
# Kernel 2: Uncertainty module
#   pre = W @ x + b   (1x1 conv as an MXU matmul, bf16 inputs, f32 accumulate)
#   z   = pre + 1e-10
#   sig = softplus(z)
#   att = 1 - softmax(sig, axis=HW)
#
# Transcendental-reduced reformulation (exact):
#   a   = max(max_n z, 0)              per (b, c) row
#   u_n = exp(z_n - a)                 <- the ONLY exp per element
#   v_n = exp(-a) + u_n                ( = exp(sig_n - a) )
#   sig_n = a + log(v_n)               <- the only log per element
#   softmax(sig)_n = v_n / sum_m v_m   (the exp(a) factor cancels)
# ----------------------------------------------------------------------------
def _uncertainty_kernel(x_ref, w_ref, b_ref, sig_ref, att_ref):
    Bt = x_ref.shape[0]
    HW = x_ref.shape[2]

    # Fuse the Bt feature maps along the lane axis -> one matmul with N = Bt*HW.
    if Bt == 1:
        x2d = x_ref[0].astype(jnp.bfloat16)                       # (C, HW)
    else:
        x2d = jnp.concatenate(
            [x_ref[i].astype(jnp.bfloat16) for i in range(Bt)], axis=-1)

    # 1x1 conv on the MXU: bf16 x bf16 -> f32 accumulate.
    pre = jnp.dot(w_ref[...], x2d,
                  preferred_element_type=jnp.float32)             # (C, Bt*HW) f32
    pre = pre + b_ref[...]                                        # bias (C, 1)
    z = pre + 1e-10                                               # softplus(conv(x)+1e-10)

    for i in range(Bt):
        zi = z[:, i * HW:(i + 1) * HW]                            # static lane slice
        a = jnp.maximum(jnp.max(zi, axis=-1, keepdims=True), 0.0)  # (C, 1)
        u = jnp.exp(zi - a)                                        # 1 exp / element
        t0 = jnp.exp(-a)                                           # per-row only
        v = t0 + u
        sig = a + jnp.log(v)                                       # softplus, 1 log / element
        denom = jnp.sum(v, axis=-1, keepdims=True)
        att = 1.0 - v * pl.reciprocal(denom, approx=True)          # EUP vrcp

        sig_ref[i] = sig
        att_ref[i] = att


def uncertainty_forward(x, conv_w, conv_b, *, training=False, sample_number=5,
                        noise_key=None, batch_tile=None):
    """Mirror of Uncertainty.forward.

    x:       (B, C, H, W) float32
    conv_w:  (C, C) (or (C, C, 1, 1)) 1x1-conv weight
    conv_b:  (C,)
    Returns (sample_features, mu, sig, attention) like the PyTorch module.
    """
    B, C, H, W = x.shape
    HW = H * W
    x = x.astype(jnp.float32)
    x_flat = x.reshape(B, C, HW)

    # Pick Bt so the fused matmul N dim (Bt*HW) reaches 256 (full MXU width on
    # v6e/v7x) while dividing B.  Fusion needs HW to be a multiple of 128 so the
    # lane concat/slices stay vreg-aligned; otherwise fall back to Bt = 1.
    if batch_tile is None:
        batch_tile = 1
        if HW % 128 == 0:
            for cand in range(1, min(B, 8) + 1):
                if B % cand == 0:
                    batch_tile = cand
                    if cand * HW >= 256:
                        break
    Bt = int(batch_tile)
    if Bt < 1 or B % Bt != 0 or (Bt > 1 and HW % 128 != 0):
        Bt = 1

    w_bf16 = conv_w.reshape(C, C).astype(jnp.bfloat16)   # half the resident bytes
    bias = conv_b.reshape(C, 1).astype(jnp.float32)

    # Explicit VMEM budget: single-copy weight/bias + double-buffered x/sig/att
    # blocks, with 2x headroom; floored at the universal 16 MiB default and
    # capped well under v7x's 64 MiB physical VMEM.
    blk_bytes = Bt * C * HW * 4
    need = (C * C * 2 + C * 4) + 3 * 2 * blk_bytes
    vmem_limit = int(min(max(2 * need, 16 * 1024 * 1024), 56 * 1024 * 1024))

    sig_flat, att_flat = pl.pallas_call(
        _uncertainty_kernel,
        out_shape=(
            jax.ShapeDtypeStruct((B, C, HW), jnp.float32),
            jax.ShapeDtypeStruct((B, C, HW), jnp.float32),
        ),
        grid_spec=pltpu.PrefetchScalarGridSpec(
            num_scalar_prefetch=0,
            grid=(B // Bt,),
            in_specs=[
                pl.BlockSpec((Bt, C, HW), lambda g: (g, 0, 0)),
                # Invariant weight & bias: whole-operand VMEM residents -> one
                # copy for the entire grid, no double-buffering.
                pl.BlockSpec(memory_space=pltpu.MemorySpace.VMEM),
                pl.BlockSpec(memory_space=pltpu.MemorySpace.VMEM),
            ],
            out_specs=[
                pl.BlockSpec((Bt, C, HW), lambda g: (g, 0, 0)),
                pl.BlockSpec((Bt, C, HW), lambda g: (g, 0, 0)),
            ],
        ),
        compiler_params=pltpu.CompilerParams(
            dimension_semantics=("parallel",),   # batch grid -> both v7x TCs
            vmem_limit_bytes=vmem_limit,
        ),
    )(x_flat, w_bf16, bias)

    sig = sig_flat.reshape(B, C, H, W)
    attention = att_flat.reshape(B, C, H, W)
    mu = x

    sample_features = []
    if training:
        # torch.distributions.Normal(0,1).sample() is a *scalar* per iteration.
        eps = jax.random.normal(noise_key, (sample_number,), dtype=jnp.float32)
        for k in range(sample_number):
            sample_features.append(mu + eps[k] * sig)

    # NOTE: `mus = mu * attention` is computed but discarded in the reference
    # module, so it is intentionally omitted here.
    return sample_features, mu, sig, attention


# ----------------------------------------------------------------------------
# Pure-JAX reference (mirrors the kernel's bf16 MXU precision so the check
# validates the kernel's math/plumbing rather than bf16-vs-f32 drift)
# ----------------------------------------------------------------------------
def _uncertainty_ref(x, conv_w, conv_b):
    B, C, H, W = x.shape
    w = conv_w.reshape(C, C).astype(jnp.bfloat16)
    pre = jnp.einsum("oc,bchw->bohw", w, x.astype(jnp.bfloat16),
                     preferred_element_type=jnp.float32)
    pre = pre + conv_b.reshape(1, C, 1, 1).astype(jnp.float32)
    sig = jax.nn.softplus(pre + 1e-10)
    att = 1.0 - jax.nn.softmax(sig.reshape(B, C, H * W), axis=-1)
    return sig, att.reshape(B, C, H, W)


# ----------------------------------------------------------------------------
# Demo
# ----------------------------------------------------------------------------
if __name__ == "__main__":
    key = jax.random.PRNGKey(0)
    k_img, k_feat, k_w, k_b, k_noise = jax.random.split(key, 5)

    # --- preprocess_image path -------------------------------------------
    B_img, C_img, H_img, W_img = 2, 3, 32, 32
    images = jax.random.uniform(k_img, (B_img, C_img, H_img, W_img),
                                dtype=jnp.float32) * 255.0
    pixel_mean = jnp.array([123.675, 116.28, 103.53], dtype=jnp.float32)
    pixel_std = jnp.array([58.395, 57.12, 57.375], dtype=jnp.float32)
    norm_images = preprocess_image(images, pixel_mean, pixel_std)
    jax.block_until_ready(norm_images)

    ref_norm = (images - pixel_mean.reshape(1, 3, 1, 1)) / pixel_std.reshape(1, 3, 1, 1)
    assert jnp.allclose(norm_images, ref_norm, atol=1e-5, rtol=1e-5), "preprocess mismatch"

    # --- Uncertainty path --------------------------------------------------
    # TODO(synk): backbone(images) is an external registry module; use a
    # deterministic random feature map as its stand-in.  Spatial 16x8 matches
    # the real ResNet output aspect (real channels would be 2048).
    B, C, H, W = 4, 128, 16, 8
    features = jax.random.normal(k_feat, (B, C, H, W), dtype=jnp.float32)

    conv_w = jax.random.normal(k_w, (C, C), dtype=jnp.float32) * 0.05
    conv_b = jax.random.normal(k_b, (C,), dtype=jnp.float32) * 0.01

    samples, mu, sig, attention = uncertainty_forward(
        features, conv_w, conv_b, training=True, sample_number=5,
        noise_key=k_noise)
    jax.block_until_ready((mu, sig, attention))
    for s in samples:
        jax.block_until_ready(s)

    # correctness check vs. pure-JAX reference (tolerances relaxed for bf16
    # MXU accumulation-order differences + approx reciprocal)
    sig_ref, att_ref = _uncertainty_ref(features, conv_w, conv_b)
    assert jnp.allclose(sig, sig_ref, atol=1e-3, rtol=1e-3), "sig mismatch"
    assert jnp.allclose(attention, att_ref, atol=1e-3, rtol=1e-3), "attention mismatch"
    assert mu.shape == (B, C, H, W)
    assert len(samples) == 5 and samples[0].shape == (B, C, H, W)

    # TODO(synk): heads(features)/heads(samples), VarianceLoss, OIMLoss and the
    # cross-entropy/triplet/circle/cosface losses depend on cfg-built modules
    # not defined in this file and are not translated.

    print("KERNEL_OK")
</pallas_src>

<mosaic_0001>
module attributes {stable_mosaic.version = 11 : i64} {
  func.func @_preprocess_kernel(%arg0: i32, %arg1: i32, %arg2: memref<1x3x1024xf32, #tpu.memory_space<vmem>>, %arg3: memref<1x3x1xf32, #tpu.memory_space<vmem>>, %arg4: memref<1x3x1xf32, #tpu.memory_space<vmem>>, %arg5: memref<1x3x1024xf32, #tpu.memory_space<vmem>>) attributes {dimension_semantics = [#tpu.dimension_semantics<parallel>, #tpu.dimension_semantics<parallel>], iteration_bounds = array<i64: 2, 1>, scalar_prefetch = 0 : i64, scratch_operands = 0 : i64, tpu.core_type = #tpu.core_type<tc>, window_params = [{transform_indices = @transform_0, window_bounds = array<i64: 1, 3, 1024>}, {pipeline_mode = #tpu.pipeline_mode<synchronous>, transform_indices = @transform_1, window_bounds = array<i64: 1, 3, 1>}, {pipeline_mode = #tpu.pipeline_mode<synchronous>, transform_indices = @transform_2, window_bounds = array<i64: 1, 3, 1>}, {transform_indices = @transform_3, window_bounds = array<i64: 1, 3, 1024>}]} {
    %c0 = arith.constant 0 : index
    %c0_0 = arith.constant 0 : index
    %c0_1 = arith.constant 0 : index
    %0 = vector.load %arg2[%c0, %c0_0, %c0_1] : memref<1x3x1024xf32, #tpu.memory_space<vmem>>, vector<1x3x1024xf32>
    %c0_2 = arith.constant 0 : index
    %c0_3 = arith.constant 0 : index
    %c0_4 = arith.constant 0 : index
    %1 = vector.load %arg3[%c0_2, %c0_3, %c0_4] : memref<1x3x1xf32, #tpu.memory_space<vmem>>, vector<1x3x1xf32>
    %2 = vector.broadcast %1 : vector<1x3x1xf32> to vector<1x3x1024xf32>
    %3 = arith.subf %0, %2 : vector<1x3x1024xf32>
    %c0_5 = arith.constant 0 : index
    %c0_6 = arith.constant 0 : index
    %c0_7 = arith.constant 0 : index
    %4 = vector.load %arg4[%c0_5, %c0_6, %c0_7] : memref<1x3x1xf32, #tpu.memory_space<vmem>>, vector<1x3x1xf32>
    %5 = vector.broadcast %4 : vector<1x3x1xf32> to vector<1x3x1024xf32>
    %6 = arith.mulf %3, %5 : vector<1x3x1024xf32>
    %c0_8 = arith.constant 0 : index
    %c0_9 = arith.constant 0 : index
    %c0_10 = arith.constant 0 : index
    %7 = vector.load %arg5[%c0_8, %c0_9, %c0_10] : memref<1x3x1024xf32, #tpu.memory_space<vmem>>, vector<1x3x1024xf32>
    tpu.vector_store %arg5[%c0_8, %c0_9, %c0_10], %6 {strides = array<i32>} : memref<1x3x1024xf32, #tpu.memory_space<vmem>>, vector<1x3x1024xf32>,
    return
  }
  func.func @transform_0(%arg0: i32, %arg1: i32) -> (i32, i32, i32) {
    %c0_i32 = arith.constant 0 : i32
    %c0_i32_0 = arith.constant 0 : i32
    return %arg0, %c0_i32, %arg1 : i32, i32, i32
  }
  func.func @transform_1(%arg0: i32, %arg1: i32) -> (i32, i32, i32) {
    %c0_i32 = arith.constant 0 : i32
    %c0_i32_0 = arith.constant 0 : i32
    %c0_i32_1 = arith.constant 0 : i32
    %c0_i32_2 = arith.constant 0 : i32
    return %c0_i32, %c0_i32_0, %c0_i32_1 : i32, i32, i32
  }
  func.func @transform_2(%arg0: i32, %arg1: i32) -> (i32, i32, i32) {
    %c0_i32 = arith.constant 0 : i32
    %c0_i32_0 = arith.constant 0 : i32
    %c0_i32_1 = arith.constant 0 : i32
    %c0_i32_2 = arith.constant 0 : i32
    return %c0_i32, %c0_i32_0, %c0_i32_1 : i32, i32, i32
  }
  func.func @transform_3(%arg0: i32, %arg1: i32) -> (i32, i32, i32) {
    %c0_i32 = arith.constant 0 : i32
    %c0_i32_0 = arith.constant 0 : i32
    return %arg0, %c0_i32, %arg1 : i32, i32, i32
  }
}

</mosaic_0001>

<bundles_post_ra>
// kernel: tpu_custom_call.1
= control target key start
LH: loop header
LB: loop body
LE: loop exit
PB: predicated region body
PF: predicated region fallthrough
CT: control target
= control target key end

     0   :  { %s425_s12 = smov 0   ;;  %s427_s13 = smov 0   ;;  %s464_s0 = inlined_call_operand.vmem [shape: f32[2,3,1024], index: 0, kind: input, shape index: {}]   ;;  %s465_s1 = inlined_call_operand.vmem [shape: f32[1,3,1], index: 1, kind: input, shape index: {}]   ;;  %s466_s2 = inlined_call_operand.vmem [shape: f32[1,3,1], index: 2, kind: input, shape index: {}]   ;;  %s467_s3 = inlined_call_operand.vmem [shape: f32[2,3,1024], index: 3, kind: output, shape index: {}]  }
   0x1   :  { %s429_s14 = smov 0  }
   0x2 LB: > { %s25_s15 = sadd.s32 1, %s397_s13  ;;  %p343_p0 = scmp.ge.s32.totalorder %s401_s14, 1  ;;  %s401_s14 = sphi %s429_s14, %s13_s14   ;;  %s397_s13 = sphi %s427_s13, %s469_s13   ;;  %s393_s12 = sphi %s425_s12, %s468_s12  }
   0x3   : > { %p27_p1 = scmp.ge.s32.totalorder %s25_s15, 2  ;;  %p158_p2 = scmp.lt.s32.totalorder %s401_s14, 3 }
   0x5   : > { %s471_s15 = smov (%p27_p1, %s25_s15), 0  ;;  %p159_p3 = pnand %p343_p0, %p158_p2 }
   0x6   : > { %v214_v0 = vld [vmem:[%s465_s1] sm:$0x7] (!%p159_p3)  ;;  %v403_v1 = vmov (!%p159_p3), 0   ;;  %p191_p4 = scmp.lt.s32.totalorder (!%p159_p3), %s393_s12, 1  ;;  %v404_v3 = vmov (!%p159_p3), 839922192   ;;  %v222_v5 = vlaneseq (!%p159_p3) }
   0x7   : > { %162 = sbr.rel (%p159_p3) target bundleno = 146 (0x92), region = 32  ;;  %378 = vset.pattern.permute.xlu0 (!%p159_p3), %v403_v1  ;;  %v231_v2 = vld [vmem:[%s466_s2] sm:$0x7] (!%p159_p3)  ;;  %v220_v4 = vunpack.c.l.s4 (!%p159_p3), %v404_v3 }
   0x8   : > { %217 = vperm.xlu0 (!%p159_p3), %378, %v214_v0   ;;  %v223_v7 = vshrl.u32 (!%p159_p3), %v222_v5, 7 }
   0x9   : > { %v221_v6 = vunpack.c.0.s8 (!%p159_p3), %v220_v4 }
   0xb   : > { %v224_v8 = vsub.s32 (!%p159_p3), %v221_v6, %v223_v7 }
   0xc   : > { %234 = vperm.xlu0 (!%p159_p3), %378, %v231_v2  }
   0xe   : > { %s473_s12 = smov (!%p191_p4, %s393_s12), 1 }
   0xf   : > { %s350_s20 = sshll.u32 %s473_s12, 5 }
  0x10   : > { %s198_s23 = scalar_lea.vmem %s464_s0, %s350_s20  ;;  %s208_s26 = scalar_lea.vmem %s467_s3, %s350_s20 }
  0x11   : > { %v210_v10 = vld [vmem:[%s198_s23] sm:$0x77]  ;;  %v211_v12 = vld [vmem:[%s198_s23 + $0x8] sm:$0x77]  ;;  %v212_v13 = vld [vmem:[%s198_s23 + $0x10] sm:$0x77] }
  0x12   : > { %v213_v14 = vld [vmem:[%s198_s23 + $0x18] sm:$0x77] }
  0x87   : > { %v218_v9 = vpop.permute.xlu0 %217 }
  0x88   : > { %v225_v11 = vrot.slane %v218_v9, %v224_v8 }
  0x8a   : > { %v227_v15 = vsub.f32 %v210_v10, %v225_v11  ;;  %v228_v17 = vsub.f32 %v211_v12, %v225_v11  ;;  %v229_v18 = vsub.f32 %v212_v13, %v225_v11  ;;  %v230_v19 = vsub.f32 %v213_v14, %v225_v11 }
  0x8b   : > { %v235_v16 = vpop.permute.xlu0 %234 }
  0x8c   : > { %v242_v20 = vrot.slane %v235_v16, %v224_v8 }
  0x8e   : > { %v244_v21 = vmul.f32 %v242_v20, %v227_v15  ;;  %v245_v22 = vmul.f32 %v242_v20, %v228_v17  ;;  %v246_v23 = vmul.f32 %v242_v20, %v229_v18  ;;  %v247_v24 = vmul.f32 %v242_v20, %v230_v19 }
  0x90   : > { %248 = vst [vmem:[%s208_s26] sm:$0x77] %v244_v21  ;;  %249 = vst [vmem:[%s208_s26 + $0x8] sm:$0x77] %v245_v22 }
  0x91   : > { %250 = vst [vmem:[%s208_s26 + $0x10] sm:$0x77] %v246_v23  ;;  %251 = vst [vmem:[%s208_s26 + $0x18] sm:$0x77] %v247_v24 }
  0x92 PF: > { %s13_s14 = sadd.s32 1, %s401_s14   ;;  %s468_s12 = smov %s397_s13 }
  0x93   : > { %p10_p5 = scmp.ge.s32.totalorder %s13_s14, 4   ;;  %s469_s13 = smov %s471_s15 }
  0x95   :  { %12 = sbr.rel (!%p10_p5) target bundleno = 2 (0x2), region = 62 }

</bundles_post_ra>
